<compile_context>
chip_gen: v7x
topology: tpu7x:2x2x1
jax: 0.10.0
libtpu: 0.0.40
codegen_flags: <defaults>
</compile_context>

<pallas_src>
import functools
import math
import numpy as np
import jax
import jax.numpy as jnp
from jax.experimental import pallas as pl
from jax.experimental.pallas import tpu as pltpu


# ----------------------------------------------------------------------------
# BMN interpolation sampling mask (exact numpy port of the PyTorch module code)
# ----------------------------------------------------------------------------
def _get_interp1d_bin_mask(seg_xmin, seg_xmax, tscale, num_sample, num_sample_perbin):
    plen = float(seg_xmax - seg_xmin)
    plen_sample = plen / (num_sample * num_sample_perbin - 1.0)
    total_samples = [seg_xmin + plen_sample * ii for ii in range(num_sample * num_sample_perbin)]
    p_mask = []
    for idx in range(num_sample):
        bin_samples = total_samples[idx * num_sample_perbin:(idx + 1) * num_sample_perbin]
        bin_vector = np.zeros([tscale])
        for sample in bin_samples:
            sample_upper = math.ceil(sample)
            sample_decimal, sample_down = math.modf(sample)
            if 0 <= int(sample_down) <= tscale - 1:
                bin_vector[int(sample_down)] += 1 - sample_decimal
            if 0 <= int(sample_upper) <= tscale - 1:
                bin_vector[int(sample_upper)] += sample_decimal
        bin_vector = 1.0 / num_sample_perbin * bin_vector
        p_mask.append(bin_vector)
    return np.stack(p_mask, axis=1)


def get_interp1d_mask(tscale, dscale, num_sample, num_sample_perbin, prop_extend_ratio):
    mask_mat = []
    for start_index in range(tscale):
        mask_mat_vector = []
        for duration_index in range(dscale):
            if start_index + duration_index < tscale:
                p_xmin = start_index
                p_xmax = start_index + duration_index
                center_len = float(p_xmax - p_xmin) + 1
                sample_xmin = p_xmin - center_len * prop_extend_ratio
                sample_xmax = p_xmax + center_len * prop_extend_ratio
                p_mask = _get_interp1d_bin_mask(
                    sample_xmin, sample_xmax, tscale, num_sample, num_sample_perbin)
            else:
                p_mask = np.zeros([tscale, num_sample])
            mask_mat_vector.append(p_mask)
        mask_mat_vector = np.stack(mask_mat_vector, axis=2)
        mask_mat.append(mask_mat_vector)
    mask_mat = np.stack(mask_mat, axis=3).astype(np.float32)
    return mask_mat  # (tscale, num_sample, dscale, tscale)


# ----------------------------------------------------------------------------
# One-time (per module config) preprocessing
# ----------------------------------------------------------------------------
def _round_up(x, m):
    return ((x + m - 1) // m) * m


def _default_dt_tile():
    # v7x has only 64 MiB VMEM per TensorCore -> keep streamed mask tiles at 512;
    # v5e / v6e (128 MiB physical VMEM) take 1024 (fewer grid steps, better DMA hiding).
    try:
        kind = jax.devices()[0].device_kind.lower()
    except Exception:
        kind = ""
    return 512 if ("v7" in kind or "tpu7" in kind) else 1024


def prepare_sample_mask(sample_mask, dt_tile=None):
    """One-time relayout of the constant BMN interpolation mask.

    (T, N, D, T) f32 -> (N*T, DT_pad) bf16 with DT_pad a multiple of dt_tile
    (lane-dense streamed operand of kernel B).  Cache the result; do NOT redo
    this per forward call.
    Returns (mask_flat, meta) where meta are the static ints the forward needs.
    """
    T, N, dscale, tscale = sample_mask.shape
    DT = int(dscale) * int(tscale)
    if dt_tile is None:
        dt_tile = _default_dt_tile()
    dt_tile = max(128, min(int(dt_tile), _round_up(DT, 128)))
    DT_pad = _round_up(DT, dt_tile)
    mask_flat = jnp.transpose(jnp.asarray(sample_mask, jnp.float32), (1, 0, 2, 3))
    mask_flat = mask_flat.reshape(int(N) * int(T), DT)
    mask_flat = jnp.pad(mask_flat, ((0, 0), (0, DT_pad - DT))).astype(jnp.bfloat16)
    meta = {"dscale": int(dscale), "tscale": int(tscale), "DT": DT, "dt_tile": dt_tile}
    return mask_flat, meta


def prepare_params(params):
    """One-time weight relayout into the forms the kernels consume
    (bf16 matmul operands + f32 column biases).  Arrays only (jit-friendly)."""
    w1, b1 = params["w1"], params["b1"]     # (hid, C_in, 3), (hid,)
    w3, b3 = params["w3"], params["b3"]     # (roi, hid, N, 1), (roi,)
    w2, b2 = params["w2"], params["b2"]     # (C_out, roi, 1, 1), (C_out,)
    hid, C_in, _ = w1.shape
    roi, _, N, _ = w3.shape
    C_out = w2.shape[0]
    w1col = jnp.transpose(w1, (0, 2, 1)).reshape(hid, 3 * C_in).astype(jnp.bfloat16)
    b1c = b1.reshape(hid, 1).astype(jnp.float32)
    # rows ordered (r, n): kernel A's per-batch (roi*N, T) output then reshapes for
    # free into the (B*roi, N*T) operand kernel B wants (cols (n, t) match mask rows).
    w3flat = jnp.transpose(w3[..., 0], (0, 2, 1)).reshape(roi * N, hid).astype(jnp.bfloat16)
    b3c = b3.reshape(roi, 1).astype(jnp.float32)
    w2m = w2[:, :, 0, 0].astype(jnp.bfloat16)
    b2c = b2.reshape(C_out, 1).astype(jnp.float32)
    return {"w1col": w1col, "b1c": b1c, "w3flat": w3flat, "b3c": b3c,
            "w2m": w2m, "b2c": b2c}


# ----------------------------------------------------------------------------
# Kernel A: per batch element b (grid over B)
#   xcol : (3*C_in, T) bf16 (streamed)   w1 : (hid, 3*C_in) bf16 (resident)
#   b1   : (hid, 1) f32                  w3 : (roi*N, hid)  bf16 (resident)
#   z    : (roi*N, T) bf16  -- already in the row order (r, n) kernel B wants
# ----------------------------------------------------------------------------
def reduce_conv_kernel(xcol_ref, w1_ref, b1_ref, w3_ref, z_ref):
    y = jnp.dot(w1_ref[...], xcol_ref[...], preferred_element_type=jnp.float32)
    y = jnp.maximum(y + b1_ref[...], 0.0).astype(jnp.bfloat16)           # (hid, T)
    z = jnp.dot(w3_ref[...], y, preferred_element_type=jnp.float32)       # (roi*N, T)
    z_ref[...] = z.astype(z_ref.dtype)


# ----------------------------------------------------------------------------
# Kernel B: one streamed DT tile of the interpolation mask (grid over DT tiles)
#   zr   : (B*roi, N*T)   bf16 (resident, single-buffered)
#   mask : (N*T, dt_tile) bf16 (streamed)
#   b3   : (roi, 1) f32   w2 : (C_out, roi) bf16   b2 : (C_out, 1) f32
#   out  : (B, C_out, dt_tile) f32, lane-dense (dt_tile multiple of 128)
# ----------------------------------------------------------------------------
def bmn_map_kernel(zr_ref, mask_ref, b3_ref, w2_ref, b2_ref, o_ref):
    B = o_ref.shape[0]
    roi = w2_ref.shape[1]
    mask = mask_ref[...]
    b3 = b3_ref[...]        # hoisted out of the static b-loop
    w2 = w2_ref[...]
    b2 = b2_ref[...]
    for b in range(B):      # static loop; live f32 intermediate capped at (roi, dt)
        m3 = jnp.dot(zr_ref[b * roi:(b + 1) * roi, :], mask,
                     preferred_element_type=jnp.float32)
        m3 = jnp.maximum(m3 + b3, 0.0).astype(jnp.bfloat16)               # (roi, dt)
        out_b = jnp.dot(w2, m3, preferred_element_type=jnp.float32)       # (C_out, dt)
        o_ref[b] = jnp.maximum(out_b + b2, 0.0)


# ----------------------------------------------------------------------------
# Forward pass
# ----------------------------------------------------------------------------
def bmn_extractor_forward(x, prep, mask_flat, *, dscale, tscale, DT, dt_tile):
    """x: (B, C_in, T) float32; prep = prepare_params(...); mask_flat from
    prepare_sample_mask(...).  Returns (B, C_out, dscale, tscale) float32."""
    B, C_in, T = x.shape
    hid = prep["w1col"].shape[0]
    roiN = prep["w3flat"].shape[0]
    roi = prep["b3c"].shape[0]
    N = roiN // roi
    C_out = prep["w2m"].shape[0]
    NT = N * T
    DT_pad = mask_flat.shape[1]
    assert T == tscale and mask_flat.shape[0] == NT and DT_pad % dt_tile == 0
    n_tiles = DT_pad // dt_tile

    resident = functools.partial(pl.BlockSpec, pipeline_mode=pl.Buffered(1))

    # ---- glue: im2col of the k=3 conv (cheap, fused by XLA under jit) ----
    x_pad = jnp.pad(x, ((0, 0), (0, 0), (1, 1)))                          # (B, C_in, T+2)
    cols = jnp.stack([x_pad[:, :, k:k + T] for k in range(3)], axis=1)    # (B, 3, C_in, T)
    xcol = cols.reshape(B, 3 * C_in, T).astype(jnp.bfloat16)

    # ---- kernel A: grid over batch; weights resident, activations streamed ----
    vmem_a = (2 * 3 * C_in * T * 2                   # xcol blocks (double-buffered)
              + hid * 3 * C_in * 2 + hid * 4         # w1col + b1 (single-buffered)
              + roiN * hid * 2                       # w3flat (single-buffered)
              + 2 * roiN * T * 2                     # bf16 output blocks (double-buffered)
              + hid * T * 4 + roiN * T * 4)          # f32 intermediates
    vmem_a = min(max(int(vmem_a * 1.25) + (2 << 20), 32 << 20), 100 << 20)

    z = pl.pallas_call(
        reduce_conv_kernel,
        out_shape=jax.ShapeDtypeStruct((B, roiN, T), jnp.bfloat16),
        grid_spec=pltpu.PrefetchScalarGridSpec(
            num_scalar_prefetch=0,
            grid=(B,),
            in_specs=[
                pl.BlockSpec((None, 3 * C_in, T), lambda b: (b, 0, 0)),   # streamed
                resident((hid, 3 * C_in), lambda b: (0, 0)),
                resident((hid, 1), lambda b: (0, 0)),
                resident((roiN, hid), lambda b: (0, 0)),
            ],
            out_specs=pl.BlockSpec((None, roiN, T), lambda b: (b, 0, 0)),
        ),
        compiler_params=pltpu.CompilerParams(
            dimension_semantics=("parallel",),
            vmem_limit_bytes=vmem_a),
    )(xcol, prep["w1col"], prep["b1c"], prep["w3flat"])

    # (B, roi*N, T) -> (B*roi, N*T): pure row-major regrouping (free when T % 128 == 0,
    # a cheap copy otherwise).  Rows are (b, r), cols (n, t) = mask_flat's row order.
    zr = z.reshape(B * roi, NT)

    # ---- kernel B: resident zr, streamed lane-dense mask tiles ----
    vmem_b = (B * roi * NT * 2                       # zr (single-buffered)
              + 2 * NT * dt_tile * 2                 # mask tiles (double-buffered)
              + 2 * B * C_out * dt_tile * 4          # output tiles (double-buffered)
              + roi * dt_tile * 6 + C_out * dt_tile * 4   # per-b intermediates
              + roi * 4 + C_out * roi * 2 + C_out * 4)
    vmem_b = min(max(int(vmem_b * 1.25) + (2 << 20), 32 << 20), 100 << 20)

    # TODO(synk): for very large B on v7x (zr block > ~40 MB) switch to an NT-tiled
    # accumulator variant (extra "arbitrary" grid axis) instead of a resident zr.
    out = pl.pallas_call(
        bmn_map_kernel,
        out_shape=jax.ShapeDtypeStruct((B, C_out, DT_pad), jnp.float32),
        grid_spec=pltpu.PrefetchScalarGridSpec(
            num_scalar_prefetch=0,
            grid=(n_tiles,),
            in_specs=[
                resident((B * roi, NT), lambda j: (0, 0)),     # zr: resident, 1 buffer
                pl.BlockSpec((NT, dt_tile), lambda j: (0, j)), # mask: streamed tiles
                resident((roi, 1), lambda j: (0, 0)),
                resident((C_out, roi), lambda j: (0, 0)),
                resident((C_out, 1), lambda j: (0, 0)),
            ],
            out_specs=pl.BlockSpec((B, C_out, dt_tile), lambda j: (0, 0, j)),
        ),
        compiler_params=pltpu.CompilerParams(
            dimension_semantics=("parallel",),
            vmem_limit_bytes=vmem_b),
    )(zr, mask_flat, prep["b3c"], prep["w2m"], prep["b2c"])

    return out[:, :, :DT].reshape(B, C_out, dscale, tscale)


# ----------------------------------------------------------------------------
# Pure-JAX reference (correctness check only)
# ----------------------------------------------------------------------------
def reference_forward(x, params, sample_mask):
    w1, b1 = params["w1"], params["b1"]
    w3, b3 = params["w3"], params["b3"]
    w2, b2 = params["w2"], params["b2"]
    B, C_in, T = x.shape
    hid = w1.shape[0]
    xp = jnp.pad(x, ((0, 0), (0, 0), (1, 1)))
    y = jnp.zeros((B, hid, T), jnp.float32)
    for k in range(3):
        y = y + jnp.einsum("oc,bct->bot", w1[:, :, k], xp[:, :, k:k + T])
    y = jax.nn.relu(y + b1[None, :, None])
    mb = jnp.tensordot(y, sample_mask, axes=([2], [0]))      # (B, hid, N, D, T)
    D, Tt = mb.shape[-2:]
    mb = mb.reshape(B, hid, mb.shape[2], D * Tt)
    m3 = jax.nn.relu(jnp.einsum("rcn,bcnj->brj", w3[..., 0], mb) + b3[None, :, None])
    out = jax.nn.relu(jnp.einsum("or,brj->boj", w2[:, :, 0, 0], m3) + b2[None, :, None])
    return out.reshape(B, -1, D, Tt)


if __name__ == "__main__":
    # small config consistent with the module's __init__
    B = 2
    in_channels, hid_channels, roi_channels, out_channels = 16, 16, 32, 16
    tscale = dscale = 8
    num_sample, num_sample_perbin, prop_extend_ratio = 8, 3, 0.5

    sample_mask = jnp.asarray(
        get_interp1d_mask(tscale, dscale, num_sample, num_sample_perbin, prop_extend_ratio))

    key = jax.random.PRNGKey(0)
    k = jax.random.split(key, 8)
    params = {
        "w1": 0.1 * jax.random.normal(k[0], (hid_channels, in_channels, 3), jnp.float32),
        "b1": 0.05 * jax.random.normal(k[1], (hid_channels,), jnp.float32),
        "w3": 0.1 * jax.random.normal(k[2], (roi_channels, hid_channels, num_sample, 1), jnp.float32),
        "b3": 0.05 * jax.random.normal(k[3], (roi_channels,), jnp.float32),
        "w2": 0.1 * jax.random.normal(k[4], (out_channels, roi_channels, 1, 1), jnp.float32),
        "b2": 0.05 * jax.random.normal(k[5], (out_channels,), jnp.float32),
    }
    x = jax.random.normal(k[6], (B, in_channels, tscale), jnp.float32)

    # one-time, per-config preprocessing (cached across forward calls)
    mask_flat, mask_meta = prepare_sample_mask(sample_mask)
    prep = prepare_params(params)

    fwd = jax.jit(functools.partial(bmn_extractor_forward, **mask_meta))
    out = jax.block_until_ready(fwd(x, prep, mask_flat))

    ref = jax.block_until_ready(reference_forward(x, params, sample_mask))
    assert out.shape == (B, out_channels, dscale, tscale), out.shape
    # bf16 operands (f32 accumulation) -> looser tolerance than an all-f32 reference
    np.testing.assert_allclose(np.asarray(out), np.asarray(ref), rtol=3e-2, atol=3e-2)

    print("KERNEL_OK")
</pallas_src>

<mosaic_0001>
module attributes {stable_mosaic.version = 11 : i64} {
  func.func @bmn_map_kernel(%arg0: i32, %arg1: memref<64x64xbf16, #tpu.memory_space<vmem>>, %arg2: memref<64x128xbf16, #tpu.memory_space<vmem>>, %arg3: memref<32x1xf32, #tpu.memory_space<vmem>>, %arg4: memref<16x32xbf16, #tpu.memory_space<vmem>>, %arg5: memref<16x1xf32, #tpu.memory_space<vmem>>, %arg6: memref<2x16x128xf32, #tpu.memory_space<vmem>>) attributes {dimension_semantics = [#tpu.dimension_semantics<parallel>], iteration_bounds = array<i64: 1>, scalar_prefetch = 0 : i64, scratch_operands = 0 : i64, tpu.core_type = #tpu.core_type<tc>, window_params = [{pipeline_mode = #tpu.pipeline_mode<synchronous>, transform_indices = @transform_0, window_bounds = array<i64: 64, 64>}, {transform_indices = @transform_1, window_bounds = array<i64: 64, 128>}, {pipeline_mode = #tpu.pipeline_mode<synchronous>, transform_indices = @transform_2, window_bounds = array<i64: 32, 1>}, {pipeline_mode = #tpu.pipeline_mode<synchronous>, transform_indices = @transform_3, window_bounds = array<i64: 16, 32>}, {pipeline_mode = #tpu.pipeline_mode<synchronous>, transform_indices = @transform_4, window_bounds = array<i64: 16, 1>}, {transform_indices = @transform_5, window_bounds = array<i64: 2, 16, 128>}]} {
    %c0 = arith.constant 0 : index
    %c0_0 = arith.constant 0 : index
    %0 = vector.load %arg2[%c0, %c0_0] : memref<64x128xbf16, #tpu.memory_space<vmem>>, vector<64x128xbf16>
    %c0_1 = arith.constant 0 : index
    %c0_2 = arith.constant 0 : index
    %1 = vector.load %arg3[%c0_1, %c0_2] : memref<32x1xf32, #tpu.memory_space<vmem>>, vector<32x1xf32>
    %c0_3 = arith.constant 0 : index
    %c0_4 = arith.constant 0 : index
    %2 = vector.load %arg4[%c0_3, %c0_4] : memref<16x32xbf16, #tpu.memory_space<vmem>>, vector<16x32xbf16>
    %c0_5 = arith.constant 0 : index
    %c0_6 = arith.constant 0 : index
    %3 = vector.load %arg5[%c0_5, %c0_6] : memref<16x1xf32, #tpu.memory_space<vmem>>, vector<16x1xf32>
    %c0_7 = arith.constant 0 : index
    %c0_8 = arith.constant 0 : index
    %4 = vector.load %arg1[%c0_7, %c0_8] : memref<64x64xbf16, #tpu.memory_space<vmem>>, vector<32x64xbf16>
    %cst = arith.constant dense<0.000000e+00> : vector<32x128xf32>
    %5 = tpu.matmul %4, %0, %cst {dimension_numbers = #tpu.dot_dimension_numbers<[1], [0], [0], [1], [0, 0, 1, 1], [], []>} : vector<32x64xbf16>, vector<64x128xbf16>, vector<32x128xf32> -> vector<32x128xf32>
    %6 = vector.broadcast %1 : vector<32x1xf32> to vector<32x128xf32>
    %7 = arith.addf %5, %6 : vector<32x128xf32>
    %cst_9 = arith.constant 0.000000e+00 : f32
    %8 = vector.broadcast %cst_9 : f32 to vector<32x128xf32>
    %9 = arith.maximumf %7, %8 : vector<32x128xf32>
    %10 = arith.truncf %9 : vector<32x128xf32> to vector<32x128xbf16>
    %cst_10 = arith.constant dense<0.000000e+00> : vector<16x128xf32>
    %11 = tpu.matmul %2, %10, %cst_10 {dimension_numbers = #tpu.dot_dimension_numbers<[1], [0], [0], [1], [0, 0, 1, 1], [], []>} : vector<16x32xbf16>, vector<32x128xbf16>, vector<16x128xf32> -> vector<16x128xf32>
    %12 = vector.broadcast %3 : vector<16x1xf32> to vector<16x128xf32>
    %13 = arith.addf %11, %12 : vector<16x128xf32>
    %cst_11 = arith.constant 0.000000e+00 : f32
    %14 = vector.broadcast %cst_11 : f32 to vector<16x128xf32>
    %15 = arith.maximumf %13, %14 : vector<16x128xf32>
    %c0_12 = arith.constant 0 : index
    %c0_13 = arith.constant 0 : index
    %c0_14 = arith.constant 0 : index
    %16 = vector.load %arg6[%c0_12, %c0_13, %c0_14] : memref<2x16x128xf32, #tpu.memory_space<vmem>>, vector<1x16x128xf32>
    %17 = vector.shape_cast %16 : vector<1x16x128xf32> to vector<16x128xf32>
    %18 = vector.shape_cast %15 : vector<16x128xf32> to vector<1x16x128xf32>
    tpu.vector_store %arg6[%c0_12, %c0_13, %c0_14], %18 {strides = array<i32>} : memref<2x16x128xf32, #tpu.memory_space<vmem>>, vector<1x16x128xf32>,
    %c32 = arith.constant 32 : index
    %c0_15 = arith.constant 0 : index
    %19 = vector.load %arg1[%c32, %c0_15] : memref<64x64xbf16, #tpu.memory_space<vmem>>, vector<32x64xbf16>
    %cst_16 = arith.constant dense<0.000000e+00> : vector<32x128xf32>
    %20 = tpu.matmul %19, %0, %cst_16 {dimension_numbers = #tpu.dot_dimension_numbers<[1], [0], [0], [1], [0, 0, 1, 1], [], []>} : vector<32x64xbf16>, vector<64x128xbf16>, vector<32x128xf32> -> vector<32x128xf32>
    %21 = vector.broadcast %1 : vector<32x1xf32> to vector<32x128xf32>
    %22 = arith.addf %20, %21 : vector<32x128xf32>
    %cst_17 = arith.constant 0.000000e+00 : f32
    %23 = vector.broadcast %cst_17 : f32 to vector<32x128xf32>
    %24 = arith.maximumf %22, %23 : vector<32x128xf32>
    %25 = arith.truncf %24 : vector<32x128xf32> to vector<32x128xbf16>
    %cst_18 = arith.constant dense<0.000000e+00> : vector<16x128xf32>
    %26 = tpu.matmul %2, %25, %cst_18 {dimension_numbers = #tpu.dot_dimension_numbers<[1], [0], [0], [1], [0, 0, 1, 1], [], []>} : vector<16x32xbf16>, vector<32x128xbf16>, vector<16x128xf32> -> vector<16x128xf32>
    %27 = vector.broadcast %3 : vector<16x1xf32> to vector<16x128xf32>
    %28 = arith.addf %26, %27 : vector<16x128xf32>
    %cst_19 = arith.constant 0.000000e+00 : f32
    %29 = vector.broadcast %cst_19 : f32 to vector<16x128xf32>
    %30 = arith.maximumf %28, %29 : vector<16x128xf32>
    %c1 = arith.constant 1 : index
    %c0_20 = arith.constant 0 : index
    %c0_21 = arith.constant 0 : index
    %31 = vector.load %arg6[%c1, %c0_20, %c0_21] : memref<2x16x128xf32, #tpu.memory_space<vmem>>, vector<1x16x128xf32>
    %32 = vector.shape_cast %31 : vector<1x16x128xf32> to vector<16x128xf32>
    %33 = vector.shape_cast %30 : vector<16x128xf32> to vector<1x16x128xf32>
    tpu.vector_store %arg6[%c1, %c0_20, %c0_21], %33 {strides = array<i32>} : memref<2x16x128xf32, #tpu.memory_space<vmem>>, vector<1x16x128xf32>,
    return
  }
  func.func @transform_0(%arg0: i32) -> (i32, i32) {
    %c0_i32 = arith.constant 0 : i32
    %c0_i32_0 = arith.constant 0 : i32
    %c0_i32_1 = arith.constant 0 : i32
    return %c0_i32, %c0_i32_0 : i32, i32
  }
  func.func @transform_1(%arg0: i32) -> (i32, i32) {
    %c0_i32 = arith.constant 0 : i32
    %c0_i32_0 = arith.constant 0 : i32
    return %c0_i32, %arg0 : i32, i32
  }
  func.func @transform_2(%arg0: i32) -> (i32, i32) {
    %c0_i32 = arith.constant 0 : i32
    %c0_i32_0 = arith.constant 0 : i32
    %c0_i32_1 = arith.constant 0 : i32
    return %c0_i32, %c0_i32_0 : i32, i32
  }
  func.func @transform_3(%arg0: i32) -> (i32, i32) {
    %c0_i32 = arith.constant 0 : i32
    %c0_i32_0 = arith.constant 0 : i32
    %c0_i32_1 = arith.constant 0 : i32
    return %c0_i32, %c0_i32_0 : i32, i32
  }
  func.func @transform_4(%arg0: i32) -> (i32, i32) {
    %c0_i32 = arith.constant 0 : i32
    %c0_i32_0 = arith.constant 0 : i32
    %c0_i32_1 = arith.constant 0 : i32
    return %c0_i32, %c0_i32_0 : i32, i32
  }
  func.func @transform_5(%arg0: i32) -> (i32, i32, i32) {
    %c0_i32 = arith.constant 0 : i32
    %c0_i32_0 = arith.constant 0 : i32
    %c0_i32_1 = arith.constant 0 : i32
    return %c0_i32, %c0_i32_0, %arg0 : i32, i32, i32
  }
}

module attributes {stable_mosaic.version = 11 : i64} {
  func.func @reduce_conv_kernel(%arg0: i32, %arg1: memref<1x48x8xbf16, #tpu.memory_space<vmem>>, %arg2: memref<16x48xbf16, #tpu.memory_space<vmem>>, %arg3: memref<16x1xf32, #tpu.memory_space<vmem>>, %arg4: memref<256x16xbf16, #tpu.memory_space<vmem>>, %arg5: memref<1x256x8xbf16, #tpu.memory_space<vmem>>) attributes {dimension_semantics = [#tpu.dimension_semantics<parallel>], iteration_bounds = array<i64: 2>, scalar_prefetch = 0 : i64, scratch_operands = 0 : i64, tpu.core_type = #tpu.core_type<tc>, window_params = [{transform_indices = @transform_0, window_bounds = array<i64: 1, 48, 8>}, {pipeline_mode = #tpu.pipeline_mode<synchronous>, transform_indices = @transform_1, window_bounds = array<i64: 16, 48>}, {pipeline_mode = #tpu.pipeline_mode<synchronous>, transform_indices = @transform_2, window_bounds = array<i64: 16, 1>}, {pipeline_mode = #tpu.pipeline_mode<synchronous>, transform_indices = @transform_3, window_bounds = array<i64: 256, 16>}, {transform_indices = @transform_4, window_bounds = array<i64: 1, 256, 8>}]} {
    %c0 = arith.constant 0 : index
    %c0_0 = arith.constant 0 : index
    %0 = vector.load %arg2[%c0, %c0_0] : memref<16x48xbf16, #tpu.memory_space<vmem>>, vector<16x48xbf16>
    %c0_1 = arith.constant 0 : index
    %c0_2 = arith.constant 0 : index
    %c0_3 = arith.constant 0 : index
    %1 = vector.load %arg1[%c0_1, %c0_2, %c0_3] : memref<1x48x8xbf16, #tpu.memory_space<vmem>>, vector<1x48x8xbf16>
    %2 = vector.shape_cast %1 : vector<1x48x8xbf16> to vector<48x8xbf16>
    %cst = arith.constant dense<0.000000e+00> : vector<16x8xf32>
    %3 = tpu.matmul %0, %2, %cst {dimension_numbers = #tpu.dot_dimension_numbers<[1], [0], [0], [1], [0, 0, 1, 1], [], []>} : vector<16x48xbf16>, vector<48x8xbf16>, vector<16x8xf32> -> vector<16x8xf32>
    %c0_4 = arith.constant 0 : index
    %c0_5 = arith.constant 0 : index
    %4 = vector.load %arg3[%c0_4, %c0_5] : memref<16x1xf32, #tpu.memory_space<vmem>>, vector<16x1xf32>
    %5 = vector.broadcast %4 : vector<16x1xf32> to vector<16x8xf32>
    %6 = arith.addf %3, %5 : vector<16x8xf32>
    %cst_6 = arith.constant 0.000000e+00 : f32
    %7 = vector.broadcast %cst_6 : f32 to vector<16x8xf32>
    %8 = arith.maximumf %6, %7 : vector<16x8xf32>
    %9 = arith.truncf %8 : vector<16x8xf32> to vector<16x8xbf16>
    %c0_7 = arith.constant 0 : index
    %c0_8 = arith.constant 0 : index
    %10 = vector.load %arg4[%c0_7, %c0_8] : memref<256x16xbf16, #tpu.memory_space<vmem>>, vector<256x16xbf16>
    %cst_9 = arith.constant dense<0.000000e+00> : vector<256x8xf32>
    %11 = tpu.matmul %10, %9, %cst_9 {dimension_numbers = #tpu.dot_dimension_numbers<[1], [0], [0], [1], [0, 0, 1, 1], [], []>} : vector<256x16xbf16>, vector<16x8xbf16>, vector<256x8xf32> -> vector<256x8xf32>
    %12 = arith.truncf %11 : vector<256x8xf32> to vector<256x8xbf16>
    %c0_10 = arith.constant 0 : index
    %c0_11 = arith.constant 0 : index
    %c0_12 = arith.constant 0 : index
    %13 = vector.load %arg5[%c0_10, %c0_11, %c0_12] : memref<1x256x8xbf16, #tpu.memory_space<vmem>>, vector<1x256x8xbf16>
    %14 = vector.shape_cast %13 : vector<1x256x8xbf16> to vector<256x8xbf16>
    %15 = vector.shape_cast %12 : vector<256x8xbf16> to vector<1x256x8xbf16>
    tpu.vector_store %arg5[%c0_10, %c0_11, %c0_12], %15 {strides = array<i32>} : memref<1x256x8xbf16, #tpu.memory_space<vmem>>, vector<1x256x8xbf16>,
    return
  }
  func.func @transform_0(%arg0: i32) -> (i32, i32, i32) {
    %c0_i32 = arith.constant 0 : i32
    %c0_i32_0 = arith.constant 0 : i32
    %c0_i32_1 = arith.constant 0 : i32
    return %arg0, %c0_i32, %c0_i32_0 : i32, i32, i32
  }
  func.func @transform_1(%arg0: i32) -> (i32, i32) {
    %c0_i32 = arith.constant 0 : i32
    %c0_i32_0 = arith.constant 0 : i32
    %c0_i32_1 = arith.constant 0 : i32
    return %c0_i32, %c0_i32_0 : i32, i32
  }
  func.func @transform_2(%arg0: i32) -> (i32, i32) {
    %c0_i32 = arith.constant 0 : i32
    %c0_i32_0 = arith.constant 0 : i32
    %c0_i32_1 = arith.constant 0 : i32
    return %c0_i32, %c0_i32_0 : i32, i32
  }
  func.func @transform_3(%arg0: i32) -> (i32, i32) {
    %c0_i32 = arith.constant 0 : i32
    %c0_i32_0 = arith.constant 0 : i32
    %c0_i32_1 = arith.constant 0 : i32
    return %c0_i32, %c0_i32_0 : i32, i32
  }
  func.func @transform_4(%arg0: i32) -> (i32, i32, i32) {
    %c0_i32 = arith.constant 0 : i32
    %c0_i32_0 = arith.constant 0 : i32
    %c0_i32_1 = arith.constant 0 : i32
    return %arg0, %c0_i32, %c0_i32_0 : i32, i32, i32
  }
}

</mosaic_0001>

<bundles_post_ra>
// kernel: bmn_extractor_forward.2
= control target key start
LH: loop header
LB: loop body
LE: loop exit
PB: predicated region body
PF: predicated region fallthrough
CT: control target
= control target key end

     0   :  { %s1076_s15 = smov 0   ;;  %s1236_s0 = inlined_call_operand.vmem [shape: bf16[2,48,8], index: 0, kind: input, shape index: {}]   ;;  %s1237_s1 = inlined_call_operand.vmem [shape: bf16[16,48], index: 1, kind: input, shape index: {}]   ;;  %s1238_s2 = inlined_call_operand.vmem [shape: f32[16,1], index: 2, kind: input, shape index: {}]   ;;  %s1239_s3 = inlined_call_operand.vmem [shape: bf16[256,16], index: 3, kind: input, shape index: {}]   ;;  %s1240_s4 = inlined_call_operand.vmem [shape: bf16[2,256,8], index: 4, kind: output, shape index: {}]  }
   0x1 LB: > { %s828_s16 = sadd.s32 4294967295, %s1046_s15   ;;  %p832_p0 = scmp.ge.s32.totalorder %s1046_s15, 1  ;;  %s1046_s15 = sphi %s1076_s15, %s14_s15  }
   0x2   : > { %p162_p1 = scmp.lt.s32.totalorder %s1046_s15, 3 }
   0x4   : > { %p163_p2 = pnand %p832_p0, %p162_p1 }
   0x5   : > { %p188_p3 = scmp.lt.s32.totalorder (!%p163_p2), %s828_s16, 1  ;;  %v1048_v0 = vmov (!%p163_p2), 0.0   ;;  %vm1049_vm0 = vmmov (!%p163_p2), 0   ;;  %v207_v1 = vld [vmem:[%s1238_s2] sm:$0xff] (!%p163_p2)  ;;  %v1050_v2 = vmov (!%p163_p2), 0   ;;  %v208_v3 = vld [vmem:[%s1238_s2 + $0x8] sm:$0xff] (!%p163_p2) }
   0x6   : > { %166 = sbr.rel (%p163_p2) target bundleno = 503 (0x1f7), region = 36  ;;  %961 = vmatprep.subr.bf16.mxu0 (!%p163_p2), %v1048_v0  ;;  %967 = vmatprep.mubr.msk.bf16.mxu0 (!%p163_p2), %vm1049_vm0, %v1048_v0  ;;  %v1023_v7 = vld [vmem:[%s1237_s1] sm:$0xff] (!%p163_p2)   ;;  %vm242_vm1 = vcmask (!%p163_p2), 392192   ;;  %v1024_v8 = vld [vmem:[%s1239_s3 + $0x30] sm:$0xff] (!%p163_p2)   ;;  %vm402_vm2 = vcmask (!%p163_p2), 130048   ;;  %v1025_v21 = vld [vmem:[%s1239_s3 + $0x38] sm:$0xff] (!%p163_p2)  }
   0x7   : > { %1019 = vset.pattern.permute.xlu0 (!%p163_p2), %v1050_v2  ;;  %985 = vmatprep.mubr.msk.bf16.mxu1 (!%p163_p2), %vm402_vm2, %v1024_v8  ;;  %v1028_v9 = vld [vmem:[%s1239_s3] sm:$0xff] (!%p163_p2)   ;;  %v1029_v22 = vld [vmem:[%s1239_s3 + $0x8] sm:$0xff] (!%p163_p2)   ;;  %v1032_v24 = vld [vmem:[%s1239_s3 + $0x10] sm:$0xff] (!%p163_p2)   ;;  %vm740_vm3 = vcmask (!%p163_p2), 60416  }
   0x8   : > { %211 = vperm.xlu0 (!%p163_p2), %1019, %v207_v1   ;;  %v1026_v23 = vld [vmem:[%s1239_s3 + $0x40] sm:$0xff] (!%p163_p2)   ;;  %v1027_v25 = vld [vmem:[%s1239_s3 + $0x48] sm:$0xff] (!%p163_p2)   ;;  %v1033_v26 = vld [vmem:[%s1239_s3 + $0x18] sm:$0xff] (!%p163_p2)  }
   0x9   : > { %v1030_v27 = vld [vmem:[%s1239_s3 + $0x50] sm:$0xff] (!%p163_p2)   ;;  %v1036_v28 = vld [vmem:[%s1239_s3 + $0x20] sm:$0xff] (!%p163_p2)   ;;  %v1031_v29 = vld [vmem:[%s1239_s3 + $0x58] sm:$0xff] (!%p163_p2)  }
   0xa   : > { %v1037_v30 = vld [vmem:[%s1239_s3 + $0x28] sm:$0xff] (!%p163_p2)   ;;  %v1034_v31 = vld [vmem:[%s1239_s3 + $0x60] sm:$0xff] (!%p163_p2)   ;;  %v1038_v33 = vld [vmem:[%s1239_s3 + $0x70] sm:$0xff] (!%p163_p2)  }
   0xb   : > { %v1035_v32 = vld [vmem:[%s1239_s3 + $0x68] sm:$0xff] (!%p163_p2)   ;;  %v1039_v34 = vld [vmem:[%s1239_s3 + $0x78] sm:$0xff] (!%p163_p2)  }
   0xc   : > { %216 = vperm.xlu0 (!%p163_p2), %1019, %v208_v3  }
   0xd   : > { %s1242_s16 = smov (!%p188_p3, %s828_s16), 1 }
   0xe   : > { %s1007_s19 = smul.u32 24, %s1242_s16  ;;  %s907_s9 = sshll.u32 %s1242_s16, 7 }
   0xf   : > { %s1167_s12 = scalar_lea.vmem %s1240_s4, %s907_s9 }
  0x10   : > { %s192_s24 = scalar_lea.vmem %s1236_s0, %s1007_s19 }
  0x11   : > { %v1020_v4 = vld [vmem:[%s192_s24] sm:$0xff]   ;;  %v1021_v5 = vld [vmem:[%s192_s24 + $0x8] sm:$0xff]   ;;  %v1022_v6 = vld [vmem:[%s192_s24 + $0x10] sm:$0xff]  }
  0x12   : > { %962 = vmatpush3.bf16.msra.mxu0 %v1020_v4 }
  0x13   : > { %963 = vmatprep.subr.bf16.mxu0 %v1048_v0 }
  0x16   : > { %964 = vmatpush3.bf16.msra.mxu0 %v1021_v5 }
  0x17   : > { %965 = vmatprep.subr.bf16.mxu0 %v1048_v0 }
  0x1a   : > { %966 = vmatpush3.bf16.msra.mxu0 %v1022_v6 }
  0x1d   : > { %968 = vmatmul.mubr.msk.bf16.vlgmr.msra.gmra.mrb[0].mxu0 %vm242_vm1, %v1023_v7 }
  0x1e   : > { %973 = vmatprep.mubr.msk.bf16.mxu0 %vm402_vm2, %v1028_v9 }
  0x87   : > { %v212_v10 = vpop.permute.xlu0 %211 }
  0x8b   : > { %v217_v14 = vpop.permute.xlu0 %216 }
  0xf0   : > { %v280_v11 = vpop.f32.mrb[0].mxu0 }
  0xf1   : > { %v281_v12 = vadd.f32 %v280_v11, %v212_v10  ;;  %v969_v13 = vpop.f32.mrb[1].mxu0 }
  0xf2   : > { %v283_v15 = vpop.f32.mrb[2].mxu0 }
  0xf3   : > { %v284_v16 = vadd.f32 %v283_v15, %v217_v14  ;;  %v970_v17 = vpop.f32.mrb[3].mxu0  ;;  %v287_v18 = vmax.f32 %v281_v12, 0.0 }
  0xf5   : > { %v288_v19 = vmax.f32 %v284_v16, 0.0 }
  0xf7   : > { %v289_v20 = vpack.c.bf16 %v288_v19, %v287_v18 }
  0xf9   : > { %971 = vmatprep.subr.bf16.mxu0 %v289_v20  ;;  %1005 = vmatprep.subr.bf16.mxu1 %v289_v20 }
  0xfa   : > { %972 = vmatpush3.bf16.msra.mxu0 %v289_v20  ;;  %1006 = vmatpush3.bf16.msra.mxu1 %v289_v20 }
  0xfd   : > { %986 = vmatmul.mubr.msk.bf16.vlgmr.msra.gmra.mrb[0].mxu1 %vm402_vm2, %v1025_v21  ;;  %974 = vmatmul.mubr.msk.bf16.vlgmr.msra.gmra.mrb[4].mxu0 %vm402_vm2, %v1029_v22 }
  0xfe   : > { %989 = vmatprep.mubr.msk.bf16.mxu1 %vm402_vm2, %v1026_v23  ;;  %977 = vmatprep.mubr.msk.bf16.mxu0 %vm402_vm2, %v1032_v24 }
 0x105   : > { %990 = vmatmul.mubr.msk.bf16.gmra.mrb[4].mxu1 %vm402_vm2, %v1027_v25  ;;  %978 = vmatmul.mubr.msk.bf16.gmra.mrb[8].mxu0 %vm402_vm2, %v1033_v26 }
 0x106   : > { %993 = vmatprep.mubr.msk.bf16.mxu1 %vm402_vm2, %v1030_v27  ;;  %981 = vmatprep.mubr.msk.bf16.mxu0 %vm402_vm2, %v1036_v28 }
 0x10d   : > { %994 = vmatmul.mubr.msk.bf16.gmra.mrb[8].mxu1 %vm402_vm2, %v1031_v29  ;;  %982 = vmatmul.mubr.msk.bf16.gmra.mrb[12].mxu0 %vm402_vm2, %v1037_v30 }
 0x10e   : > { %997 = vmatprep.mubr.msk.bf16.mxu1 %vm402_vm2, %v1034_v31 }
 0x115   : > { %998 = vmatmul.mubr.msk.bf16.gmra.mrb[12].mxu1 %vm402_vm2, %v1035_v32 }
 0x116   : > { %1001 = vmatprep.mubr.msk.bf16.mxu1 %vm402_vm2, %v1038_v33 }
 0x11d   : > { %1002 = vmatmul.mubr.msk.bf16.gmra.mrb[16].mxu1 %vm402_vm2, %v1039_v34 }
 0x1d0   : > { %v987_v35 = vpop.f32.mrb[0].mxu1  ;;  %v975_v36 = vpop.f32.mrb[4].mxu0 }
 0x1d1   : > { %v922_v37 = vpack.c.bf16 %v987_v35, %v987_v35  ;;  %v533_v38 = vpop.f32.mrb[1].mxu1  ;;  %v910_v39 = vpack.c.bf16 %v975_v36, %v975_v36  ;;  %v485_v40 = vpop.f32.mrb[5].mxu0 }
 0x1d2   : > { %v920_v41 = vpack.c.bf16 %v533_v38, %v533_v38  ;;  %v988_v42 = vpop.f32.mrb[2].mxu1  ;;  %v908_v43 = vpack.c.bf16 %v485_v40, %v485_v40  ;;  %v976_v44 = vpop.f32.mrb[6].mxu0 }
 0x1d3   : > { %755 = vst.msk [vmem:[%s1167_s12 + $0x38] sm:$0xf] %vm740_vm3, %v922_v37  ;;  %v923_v45 = vpack.c.bf16 %v988_v42, %v988_v42  ;;  %v536_v46 = vpop.f32.mrb[3].mxu1  ;;  %743 = vst.msk [vmem:[%s1167_s12 + $0x8] sm:$0xf] %vm740_vm3, %v910_v39  ;;  %v911_v47 = vpack.c.bf16 %v976_v44, %v976_v44  ;;  %v488_v48 = vpop.f32.mrb[7].mxu0 }
 0x1d4   : > { %753 = vst.msk [vmem:[%s1167_s12 + $0x30] sm:$0xf] %vm740_vm3, %v920_v41  ;;  %v921_v49 = vpack.c.bf16 %v536_v46, %v536_v46  ;;  %741 = vst.msk [vmem:[%s1167_s12] sm:$0xf] %vm740_vm3, %v908_v43  ;;  %v909_v50 = vpack.c.bf16 %v488_v48, %v488_v48 }
 0x1d5   : > { %756 = vst.msk [vmem:[%s1167_s12 + $0x3c] sm:$0xf] %vm740_vm3, %v923_v45  ;;  %744 = vst.msk [vmem:[%s1167_s12 + $0xc] sm:$0xf] %vm740_vm3, %v911_v47 }
 0x1d6   : > { %754 = vst.msk [vmem:[%s1167_s12 + $0x34] sm:$0xf] %vm740_vm3, %v921_v49  ;;  %742 = vst.msk [vmem:[%s1167_s12 + $0x4] sm:$0xf] %vm740_vm3, %v909_v50 }
 0x1d8   : > { %v991_v51 = vpop.f32.mrb[4].mxu1  ;;  %v979_v52 = vpop.f32.mrb[8].mxu0 }
 0x1d9   : > { %v926_v53 = vpack.c.bf16 %v991_v51, %v991_v51  ;;  %v549_v54 = vpop.f32.mrb[5].mxu1  ;;  %v914_v55 = vpack.c.bf16 %v979_v52, %v979_v52  ;;  %v501_v56 = vpop.f32.mrb[9].mxu0 }
 0x1da   : > { %v924_v57 = vpack.c.bf16 %v549_v54, %v549_v54  ;;  %v992_v58 = vpop.f32.mrb[6].mxu1  ;;  %v912_v59 = vpack.c.bf16 %v501_v56, %v501_v56  ;;  %v980_v60 = vpop.f32.mrb[10].mxu0 }
 0x1db   : > { %759 = vst.msk [vmem:[%s1167_s12 + $0x48] sm:$0xf] %vm740_vm3, %v926_v53  ;;  %v927_v61 = vpack.c.bf16 %v992_v58, %v992_v58  ;;  %v552_v62 = vpop.f32.mrb[7].mxu1  ;;  %747 = vst.msk [vmem:[%s1167_s12 + $0x18] sm:$0xf] %vm740_vm3, %v914_v55  ;;  %v915_v63 = vpack.c.bf16 %v980_v60, %v980_v60  ;;  %v504_v0 = vpop.f32.mrb[11].mxu0 }
 0x1dc   : > { %757 = vst.msk [vmem:[%s1167_s12 + $0x40] sm:$0xf] %vm740_vm3, %v924_v57  ;;  %v925_v1 = vpack.c.bf16 %v552_v62, %v552_v62  ;;  %745 = vst.msk [vmem:[%s1167_s12 + $0x10] sm:$0xf] %vm740_vm3, %v912_v59  ;;  %v913_v2 = vpack.c.bf16 %v504_v0, %v504_v0 }
 0x1dd   : > { %760 = vst.msk [vmem:[%s1167_s12 + $0x4c] sm:$0xf] %vm740_vm3, %v927_v61  ;;  %748 = vst.msk [vmem:[%s1167_s12 + $0x1c] sm:$0xf] %vm740_vm3, %v915_v63 }
 0x1de   : > { %758 = vst.msk [vmem:[%s1167_s12 + $0x44] sm:$0xf] %vm740_vm3, %v925_v1  ;;  %746 = vst.msk [vmem:[%s1167_s12 + $0x14] sm:$0xf] %vm740_vm3, %v913_v2 }
 0x1e0   : > { %v995_v3 = vpop.f32.mrb[8].mxu1  ;;  %v983_v4 = vpop.f32.mrb[12].mxu0 }
 0x1e1   : > { %v930_v5 = vpack.c.bf16 %v995_v3, %v995_v3  ;;  %v565_v6 = vpop.f32.mrb[9].mxu1  ;;  %v918_v7 = vpack.c.bf16 %v983_v4, %v983_v4  ;;  %v517_v8 = vpop.f32.mrb[13].mxu0 }
 0x1e2   : > { %v928_v9 = vpack.c.bf16 %v565_v6, %v565_v6  ;;  %v996_v10 = vpop.f32.mrb[10].mxu1  ;;  %v916_v11 = vpack.c.bf16 %v517_v8, %v517_v8  ;;  %v984_v12 = vpop.f32.mrb[14].mxu0 }
 0x1e3   : > { %763 = vst.msk [vmem:[%s1167_s12 + $0x58] sm:$0xf] %vm740_vm3, %v930_v5  ;;  %v931_v13 = vpack.c.bf16 %v996_v10, %v996_v10  ;;  %v568_v14 = vpop.f32.mrb[11].mxu1  ;;  %751 = vst.msk [vmem:[%s1167_s12 + $0x28] sm:$0xf] %vm740_vm3, %v918_v7  ;;  %v919_v15 = vpack.c.bf16 %v984_v12, %v984_v12  ;;  %v520_v16 = vpop.f32.mrb[15].mxu0 }
 0x1e4   : > { %761 = vst.msk [vmem:[%s1167_s12 + $0x50] sm:$0xf] %vm740_vm3, %v928_v9  ;;  %v929_v17 = vpack.c.bf16 %v568_v14, %v568_v14  ;;  %749 = vst.msk [vmem:[%s1167_s12 + $0x20] sm:$0xf] %vm740_vm3, %v916_v11  ;;  %v917_v18 = vpack.c.bf16 %v520_v16, %v520_v16 }
 0x1e5   : > { %764 = vst.msk [vmem:[%s1167_s12 + $0x5c] sm:$0xf] %vm740_vm3, %v931_v13  ;;  %752 = vst.msk [vmem:[%s1167_s12 + $0x2c] sm:$0xf] %vm740_vm3, %v919_v15 }
 0x1e6   : > { %762 = vst.msk [vmem:[%s1167_s12 + $0x54] sm:$0xf] %vm740_vm3, %v929_v17  ;;  %750 = vst.msk [vmem:[%s1167_s12 + $0x24] sm:$0xf] %vm740_vm3, %v917_v18 }
 0x1e8   : > { %v999_v19 = vpop.f32.mrb[12].mxu1 }
 0x1e9   : > { %v934_v20 = vpack.c.bf16 %v999_v19, %v999_v19  ;;  %v581_v21 = vpop.f32.mrb[13].mxu1 }
 0x1ea   : > { %v932_v22 = vpack.c.bf16 %v581_v21, %v581_v21  ;;  %v1000_v23 = vpop.f32.mrb[14].mxu1 }
 0x1eb   : > { %767 = vst.msk [vmem:[%s1167_s12 + $0x68] sm:$0xf] %vm740_vm3, %v934_v20  ;;  %v935_v24 = vpack.c.bf16 %v1000_v23, %v1000_v23  ;;  %v584_v25 = vpop.f32.mrb[15].mxu1 }
 0x1ec   : > { %765 = vst.msk [vmem:[%s1167_s12 + $0x60] sm:$0xf] %vm740_vm3, %v932_v22  ;;  %v933_v26 = vpack.c.bf16 %v584_v25, %v584_v25 }
 0x1ed   : > { %768 = vst.msk [vmem:[%s1167_s12 + $0x6c] sm:$0xf] %vm740_vm3, %v935_v24 }
 0x1ee   : > { %766 = vst.msk [vmem:[%s1167_s12 + $0x64] sm:$0xf] %vm740_vm3, %v933_v26 }
 0x1f0   : > { %v1003_v27 = vpop.f32.mrb[16].mxu1 }
 0x1f1   : > { %v938_v28 = vpack.c.bf16 %v1003_v27, %v1003_v27  ;;  %v597_v29 = vpop.f32.mrb[17].mxu1 }
 0x1f2   : > { %v936_v30 = vpack.c.bf16 %v597_v29, %v597_v29  ;;  %v1004_v31 = vpop.f32.mrb[18].mxu1 }
 0x1f3   : > { %771 = vst.msk [vmem:[%s1167_s12 + $0x78] sm:$0xf] %vm740_vm3, %v938_v28  ;;  %v939_v32 = vpack.c.bf16 %v1004_v31, %v1004_v31  ;;  %v600_v33 = vpop.f32.mrb[19].mxu1 }
 0x1f4   : > { %769 = vst.msk [vmem:[%s1167_s12 + $0x70] sm:$0xf] %vm740_vm3, %v936_v30  ;;  %v937_v34 = vpack.c.bf16 %v600_v33, %v600_v33 }
 0x1f5   : > { %772 = vst.msk [vmem:[%s1167_s12 + $0x7c] sm:$0xf] %vm740_vm3, %v939_v32 }
 0x1f6   : > { %770 = vst.msk [vmem:[%s1167_s12 + $0x74] sm:$0xf] %vm740_vm3, %v937_v34 }
 0x1f7 PF: > { %s14_s15 = sadd.s32 1, %s1046_s15  }
 0x1f8   : > { %p11_p4 = scmp.ge.s32.totalorder %s14_s15, 4  }
 0x1fa   :  { %13 = sbr.rel (!%p11_p4) target bundleno = 1 (0x1), region = 66 }

// kernel: bmn_extractor_forward.3
= control target key start
LH: loop header
LB: loop body
LE: loop exit
PB: predicated region body
PF: predicated region fallthrough
CT: control target
= control target key end

     0   :  { %v435_v1 = vmov 0   ;;  %vm95_vm0 = vcmask 523264   ;;  %v436_v13 = vmov 0.0   ;;  %vm437_vm1 = vmmov 0   ;;  %s555_s1 = inlined_call_operand.vmem [shape: bf16[64,128], index: 1, kind: input, shape index: {}]   ;;  %s556_s0 = inlined_call_operand.vmem [shape: bf16[64,64], index: 0, kind: input, shape index: {}]   ;;  %s557_s2 = inlined_call_operand.vmem [shape: f32[32,1], index: 2, kind: input, shape index: {}]   ;;  %s558_s4 = inlined_call_operand.vmem [shape: f32[16,1], index: 4, kind: input, shape index: {}]   ;;  %s559_s3 = inlined_call_operand.vmem [shape: bf16[16,32], index: 3, kind: input, shape index: {}]   ;;  %s560_s5 = inlined_call_operand.vmem [shape: f32[2,16,128], index: 5, kind: output, shape index: {}]  }
   0x1   :  { %v471_v0 = vld [vmem:[%s555_s1] sm:$0xff]   ;;  %424 = vset.pattern.permute.xlu0 %v435_v1  ;;  %425 = vset.pattern.permute.xlu1 %v435_v1  ;;  %v476_v2 = vld [vmem:[%s555_s1 + $0x8] sm:$0xff]   ;;  %v483_v3 = vld [vmem:[%s555_s1 + $0x10] sm:$0xff]   ;;  %vm172_vm2 = vcmask 261120  }
   0x2   :  { %381 = vmatprep.subr.bf16.mxu0 %v471_v0  ;;  %v430_v4 = vld [vmem:[%s556_s0] sm:$0xff]   ;;  %v31_v6 = vld [vmem:[%s557_s2 + $0x10] sm:$0xff]  ;;  %v429_v7 = vld [vmem:[%s555_s1 + $0x18] sm:$0xff]   ;;  %393 = vmatprep.subr.bf16.mxu1 %v436_v13 }
   0x3   :  { %382 = vmatpush3.bf16.msra.mxu0 %v471_v0  ;;  %389 = vmatprep.mubr.msk.bf16.mxu0 %vm95_vm0, %v430_v4  ;;  %v29_v5 = vld [vmem:[%s557_s2] sm:$0xff]  ;;  %v30_v8 = vld [vmem:[%s557_s2 + $0x8] sm:$0xff]  ;;  %v32_v9 = vld [vmem:[%s557_s2 + $0x18] sm:$0xff] }
   0x4   :  { %383 = vmatprep.subr.bf16.mxu0 %v476_v2  ;;  %43 = vperm.xlu0 %424, %v29_v5   ;;  %v35_v10 = vld [vmem:[%s558_s4] sm:$0xff]  ;;  %v36_v11 = vld [vmem:[%s558_s4 + $0x8] sm:$0xff]  ;;  %v433_v33 = vld [vmem:[%s556_s0 + $0x10] sm:$0xff]  }
   0x5   :  { %53 = vperm.xlu1 %425, %v31_v6   ;;  %v431_v12 = vld [vmem:[%s556_s0 + $0x8] sm:$0xff]   ;;  %397 = vmatprep.mubr.msk.bf16.mxu1 %vm437_vm1, %v436_v13  ;;  %v432_v32 = vld [vmem:[%s559_s3] sm:$0xff]   ;;  %v434_v34 = vld [vmem:[%s556_s0 + $0x18] sm:$0xff]  }
   0x7   :  { %384 = vmatpush3.bf16.msra.mxu0 %v476_v2 }
   0x8   :  { %385 = vmatprep.subr.bf16.mxu0 %v483_v3  ;;  %48 = vperm.xlu0 %424, %v30_v8  }
   0x9   :  { %58 = vperm.xlu1 %425, %v32_v9  }
   0xb   :  { %386 = vmatpush3.bf16.msra.mxu0 %v483_v3 }
   0xc   :  { %387 = vmatprep.subr.bf16.mxu0 %v429_v7  ;;  %159 = vperm.xlu0 %424, %v35_v10  }
   0xd   :  { %164 = vperm.xlu1 %425, %v36_v11  }
   0xf   :  { %388 = vmatpush3.bf16.msra.mxu0 %v429_v7 }
  0x10   :  { %413 = vmatprep.subr.bf16.mxu0 %v436_v13 }
  0x12   :  { %390 = vmatmul.mubr.msk.bf16.vlgmr.msra.gmra.mrb[0].mxu0 %vm95_vm0, %v431_v12 }
  0x13   :  { %417 = vmatprep.mubr.msk.bf16.mxu0 %vm437_vm1, %v436_v13 }
  0x83   :  { %v44_v15 = vpop.permute.xlu0 %43 }
  0x84   :  { %v54_v14 = vpop.permute.xlu1 %53 }
  0x87   :  { %v49_v22 = vpop.permute.xlu0 %48 }
  0x88   :  { %v59_v19 = vpop.permute.xlu1 %58 }
  0x8b   :  { %v160_v35 = vpop.permute.xlu0 %159 }
  0x8c   :  { %v165_v39 = vpop.permute.xlu1 %164 }
  0xe5   :  { %v391_v16 = vpop.f32.mrb[0].mxu0 }
  0xe6   :  { %v145_v17 = vadd.f32 %v391_v16, %v54_v14  ;;  %v136_v18 = vpop.f32.mrb[1].mxu0 }
  0xe7   :  { %v137_v20 = vadd.f32 %v136_v18, %v44_v15  ;;  %v392_v21 = vpop.f32.mrb[2].mxu0 }
  0xe8   :  { %v148_v23 = vadd.f32 %v392_v21, %v59_v19  ;;  %v139_v24 = vpop.f32.mrb[3].mxu0  ;;  %v153_v26 = vmax.f32 %v145_v17, 0.0 }
  0xe9   :  { %v140_v25 = vadd.f32 %v139_v24, %v49_v22  ;;  %v151_v28 = vmax.f32 %v137_v20, 0.0 }
  0xea   :  { %v154_v27 = vmax.f32 %v148_v23, 0.0 }
  0xeb   :  { %v152_v29 = vmax.f32 %v140_v25, 0.0 }
  0xec   :  { %v156_v30 = vpack.c.bf16 %v154_v27, %v153_v26 }
  0xed   :  { %v155_v31 = vpack.c.bf16 %v152_v29, %v151_v28 }
  0xef   :  { %394 = vmatpush3.bf16.msra.mxu1 %v155_v31 }
  0xf0   :  { %395 = vmatprep.subr.bf16.mxu1 %v436_v13 }
  0xf3   :  { %396 = vmatpush3.bf16.msra.mxu1 %v156_v30 }
  0xf4   :  { %401 = vmatprep.subr.bf16.mxu1 %v471_v0 }
  0xf6   :  { %398 = vmatmul.mubr.msk.bf16.vlgmr.msra.gmra.mrb[0].mxu1 %vm172_vm2, %v432_v32 }
  0xf7   :  { %402 = vmatpush3.bf16.msra.mxu1 %v471_v0  ;;  %409 = vmatprep.mubr.msk.bf16.mxu1 %vm95_vm0, %v433_v33 }
  0xf8   :  { %403 = vmatprep.subr.bf16.mxu1 %v476_v2 }
  0xfb   :  { %404 = vmatpush3.bf16.msra.mxu1 %v476_v2 }
  0xfc   :  { %405 = vmatprep.subr.bf16.mxu1 %v483_v3 }
  0xff   :  { %406 = vmatpush3.bf16.msra.mxu1 %v483_v3 }
 0x100   :  { %407 = vmatprep.subr.bf16.mxu1 %v429_v7 }
 0x103   :  { %408 = vmatpush3.bf16.msra.mxu1 %v429_v7 }
 0x106   :  { %410 = vmatmul.mubr.msk.bf16.vlgmr.msra.gmra.mrb[4].mxu1 %vm95_vm0, %v434_v34 }
 0x1c9   :  { %v210_v36 = vpop.f32.mrb[0].mxu1 }
 0x1ca   :  { %v211_v37 = vadd.f32 %v210_v36, %v160_v35  ;;  %v399_v38 = vpop.f32.mrb[1].mxu1 }
 0x1cb   :  { %v213_v40 = vpop.f32.mrb[2].mxu1 }
 0x1cc   :  { %v217_v41 = vmax.f32 %v211_v37, 0.0  ;;  %v214_v42 = vadd.f32 %v213_v40, %v165_v39  ;;  %v400_v43 = vpop.f32.mrb[3].mxu1 }
 0x1ce   :  { %219 = vst [vmem:[%s560_s5] sm:$0xff] %v217_v41  ;;  %v218_v44 = vmax.f32 %v214_v42, 0.0 }
 0x1d0   :  { %220 = vst [vmem:[%s560_s5 + $0x8] sm:$0xff] %v218_v44 }
 0x1d9   :  { %v411_v45 = vpop.f32.mrb[4].mxu1 }
 0x1da   :  { %v284_v46 = vadd.f32 %v411_v45, %v54_v14  ;;  %v275_v47 = vpop.f32.mrb[5].mxu1 }
 0x1db   :  { %v276_v48 = vadd.f32 %v275_v47, %v44_v15  ;;  %v412_v49 = vpop.f32.mrb[6].mxu1 }
 0x1dc   :  { %v287_v50 = vadd.f32 %v412_v49, %v59_v19  ;;  %v278_v51 = vpop.f32.mrb[7].mxu1  ;;  %v292_v53 = vmax.f32 %v284_v46, 0.0 }
 0x1dd   :  { %v279_v52 = vadd.f32 %v278_v51, %v49_v22  ;;  %v290_v55 = vmax.f32 %v276_v48, 0.0 }
 0x1de   :  { %v293_v54 = vmax.f32 %v287_v50, 0.0 }
 0x1df   :  { %v291_v56 = vmax.f32 %v279_v52, 0.0 }
 0x1e0   :  { %v295_v57 = vpack.c.bf16 %v293_v54, %v292_v53 }
 0x1e1   :  { %v294_v58 = vpack.c.bf16 %v291_v56, %v290_v55 }
 0x1e3   :  { %414 = vmatpush3.bf16.msra.mxu0 %v294_v58 }
 0x1e4   :  { %415 = vmatprep.subr.bf16.mxu0 %v436_v13 }
 0x1e7   :  { %416 = vmatpush3.bf16.msra.mxu0 %v295_v57 }
 0x1ea   :  { %418 = vmatmul.mubr.msk.bf16.vlgmr.msra.gmra.mrb[4].mxu0 %vm172_vm2, %v432_v32 }
 0x2bd   :  { %v330_v59 = vpop.f32.mrb[4].mxu0 }
 0x2be   :  { %v331_v60 = vadd.f32 %v330_v59, %v160_v35  ;;  %v419_v61 = vpop.f32.mrb[5].mxu0 }
 0x2bf   :  { %v333_v62 = vpop.f32.mrb[6].mxu0 }
 0x2c0   :  { %v337_v63 = vmax.f32 %v331_v60, 0.0  ;;  %v334_v0 = vadd.f32 %v333_v62, %v165_v39  ;;  %v420_v1 = vpop.f32.mrb[7].mxu0 }
 0x2c2   :  { %361 = vst [vmem:[%s560_s5 + $0x10] sm:$0xff] %v337_v63  ;;  %v338_v2 = vmax.f32 %v334_v0, 0.0 }
 0x2c4   :  { %362 = vst [vmem:[%s560_s5 + $0x18] sm:$0xff] %v338_v2 }

</bundles_post_ra>
